<compile_context>
chip_gen: v6e
topology: v6e:2x2x1
jax: 0.10.0
libtpu: 0.0.40
codegen_flags: <defaults>
</compile_context>

<pallas_src>
import functools
import math

import jax
import jax.numpy as jnp
from jax.experimental import pallas as pl
from jax.experimental.pallas import tpu as pltpu


# ---------------------------------------------------------------------------
# Kernel
# ---------------------------------------------------------------------------
def _rnn_cell_kernel(c_phi, nonlinearity, nh, m_pad,
                     xiy_ref, win_ref, ww_ref, out_ref):
    """pre = [xi|y|1] @ W_in_big        (columns: [u | xi | 0-pad | v],
                                         biases folded in via the ones column)
       v   = pre[:, m_pad : m_pad+nh]
       w   = act(v) - c_phi * v         (folded Aphi/Bphi algebra)
       out = pre[:, :m_pad] + w @ W_w_big   (columns: [u | xi | 0-pad])
    """
    pre = jnp.dot(xiy_ref[...], win_ref[...],
                  preferred_element_type=jnp.float32)

    v = pre[:, m_pad:m_pad + nh]          # 128-lane aligned slice

    # nonlinearity resolved at trace time (matches module's self._act)
    if nonlinearity == 'tanh':
        act = jnp.tanh(v)
    elif nonlinearity == 'relu':
        act = jnp.maximum(v, 0.0)
    else:
        act = v

    # w = z * (Bphi-Aphi)/2 with z = 2/(Bphi-Aphi) * (act(v) - (Aphi+Bphi)/2 * v)
    #   = act(v) - 0.5*(Aphi+Bphi)*v          (factors cancel exactly)
    w = act - c_phi * v

    out = pre[:, :m_pad] + jnp.dot(w, ww_ref[...],
                                   preferred_element_type=jnp.float32)
    out_ref[...] = out.astype(out_ref.dtype)


# ---------------------------------------------------------------------------
# Parameters
# ---------------------------------------------------------------------------
def init_params(key, input_size, hidden_size, state_size, output_size,
                dtype=jnp.float32):
    """Deterministic synthetic parameters, same shapes as the torch module."""
    ny, nh, nx, nu = input_size, hidden_size, state_size, output_size
    ks = jax.random.split(key, 6)

    def lin(kw, kb, out_f, in_f):
        bound = 1.0 / math.sqrt(in_f)
        w = jax.random.uniform(kw, (out_f, in_f), dtype, -bound, bound)
        b = jax.random.uniform(kb, (out_f,), dtype, -bound, bound)
        return w, b

    w_xi, b_xi = lin(ks[0], ks[1], nx, nx + nh + ny)   # _W_xi
    w_u, b_u = lin(ks[2], ks[3], nu, nx + nh + ny)     # _W_u
    w_v, b_v = lin(ks[4], ks[5], nh, nx + ny)          # _W_v
    log_std_w = jnp.full((nu, 1), math.log(0.2), dtype)  # nn.Linear(1, nu)
    return dict(W_xi=w_xi, b_xi=b_xi, W_u=w_u, b_u=b_u,
                W_v=w_v, b_v=b_v, log_std_w=log_std_w)


def prepare_params(params, *, nx, nh, ny, nu, lane_pad=128):
    """One-time weight stacking / transposition (NOT redone per forward call).

    Produces:
      W_in_big : [nx+ny+1, N]  N = Mp + nh
                 rows    = [xi-rows | y-rows | bias-row]
                 columns = [u(nu) | xi(nx) | 0-pad | v(nh)]
      W_w_big  : [nh, Mp]      columns = [u(nu) | xi(nx) | 0-pad]
    with M = nu + nx and Mp = round_up(M, 128) so the output slab is lane-dense.
    """
    dtype = params['W_xi'].dtype
    m = nu + nx
    m_pad = max(lane_pad, ((m + lane_pad - 1) // lane_pad) * lane_pad)

    def split3(w):  # w: [out, nx+nh+ny] -> (xi-part.T, w-part.T, y-part.T)
        return w[:, :nx].T, w[:, nx:nx + nh].T, w[:, nx + nh:].T

    wu_xi, wu_w, wu_y = split3(params['W_u'])
    wxi_xi, wxi_w, wxi_y = split3(params['W_xi'])
    wv_xi = params['W_v'][:, :nx].T          # [nx, nh]
    wv_y = params['W_v'][:, nx:].T           # [ny, nh]

    def stack_cols(a_u, a_xi, a_v):          # -> [rows, Mp + nh]
        rows = a_u.shape[0]
        pad = jnp.zeros((rows, m_pad - m), dtype)
        return jnp.concatenate([a_u, a_xi, pad, a_v], axis=1)

    xi_rows = stack_cols(wu_xi, wxi_xi, wv_xi)                       # [nx, N]
    y_rows = stack_cols(wu_y, wxi_y, wv_y)                           # [ny, N]
    b_row = stack_cols(params['b_u'][None, :], params['b_xi'][None, :],
                       params['b_v'][None, :])                       # [1,  N]
    w_in_big = jnp.concatenate([xi_rows, y_rows, b_row], axis=0)     # [nx+ny+1, N]

    w_w_big = jnp.concatenate(
        [wu_w, wxi_w, jnp.zeros((nh, m_pad - m), dtype)], axis=1)    # [nh, Mp]

    return dict(Win=w_in_big, Ww=w_w_big,
                log_std=params['log_std_w'].T,                       # [1, nu]
                dims=(nx, nh, ny, nu, m_pad))


# ---------------------------------------------------------------------------
# Forward wrapper
# ---------------------------------------------------------------------------
def robust_rnn_cell_tilde(prep, y, xi=None, *,
                          a_phi=0.0, b_phi=1.0, nonlinearity='tanh'):
    """Forward pass.  Returns (u, xi_, log_std) like the torch module."""
    nx, nh, ny, nu, m_pad = prep['dims']

    squeeze = (y.ndim == 1)
    if squeeze:
        y = y[None, :]
    b = y.shape[0]
    if xi is None:
        xi = jnp.zeros((b, nx), y.dtype)
    elif xi.ndim == 1:
        xi = xi[None, :]

    # batch (sublane) dim padded to a multiple of 8 for f32 vregs; the last
    # column is the folded-bias "ones" column (padding rows are discarded).
    b_pad = max(8, ((b + 7) // 8) * 8)
    k_in = nx + ny + 1
    xiy = jnp.zeros((b_pad, k_in), y.dtype)
    xiy = xiy.at[:b, :nx].set(xi)
    xiy = xiy.at[:b, nx:nx + ny].set(y)
    xiy = xiy.at[:, k_in - 1].set(1.0)

    vmem = pl.BlockSpec(memory_space=pltpu.MemorySpace.VMEM)
    kernel = functools.partial(_rnn_cell_kernel,
                               0.5 * (float(a_phi) + float(b_phi)),
                               nonlinearity, nh, m_pad)

    out = pl.pallas_call(
        kernel,
        out_shape=jax.ShapeDtypeStruct((b_pad, m_pad), y.dtype),
        in_specs=[vmem] * 3,
        out_specs=vmem,
    )(xiy, prep['Win'], prep['Ww'])

    u = out[:b, :nu]
    xi_new = out[:b, nu:nu + nx]
    # log_std is a constant row broadcast -> computed outside the kernel.
    log_std = jnp.broadcast_to(prep['log_std'], (b, nu)).astype(y.dtype)

    if squeeze:
        u, xi_new, log_std = u[0], xi_new[0], log_std[0]
    return u, xi_new, log_std


# ---------------------------------------------------------------------------
# Pure-JAX reference (mirrors the torch forward, scalar Aphi/Bphi branch)
# ---------------------------------------------------------------------------
def _reference(params, y, xi, *, a_phi=0.0, b_phi=1.0):
    xi_y = jnp.concatenate([xi, y], axis=-1)
    v = xi_y @ params['W_v'].T + params['b_v']
    w_act = jnp.tanh(v)
    z = 2.0 / (b_phi - a_phi) * (w_act - (a_phi + b_phi) / 2.0 * v)
    w = z * (b_phi - a_phi) / 2.0
    xi_w_y = jnp.concatenate([xi, w, y], axis=-1)
    u = xi_w_y @ params['W_u'].T + params['b_u']
    xi_new = xi_w_y @ params['W_xi'].T + params['b_xi']
    log_std = jnp.ones((y.shape[0], 1), y.dtype) @ params['log_std_w'].T
    return u, xi_new, log_std


if __name__ == "__main__":
    # Small shapes consistent with the module: input_size=8, hidden=16,
    # state=12, output=4, batch=2.
    ny, nh, nx, nu, batch = 8, 16, 12, 4, 2

    key = jax.random.PRNGKey(0)
    kp, ky, kxi = jax.random.split(key, 3)
    params = init_params(kp, ny, nh, nx, nu)
    prep = prepare_params(params, nx=nx, nh=nh, ny=ny, nu=nu)

    y = jax.random.normal(ky, (batch, ny), jnp.float32)
    xi = jax.random.normal(kxi, (batch, nx), jnp.float32)

    u, xi_new, log_std = robust_rnn_cell_tilde(prep, y, xi)
    jax.block_until_ready((u, xi_new, log_std))

    u_ref, xi_ref_, ls_ref = _reference(params, y, xi)
    assert jnp.allclose(u, u_ref, atol=1e-5), "u mismatch"
    assert jnp.allclose(xi_new, xi_ref_, atol=1e-5), "xi_ mismatch"
    assert jnp.allclose(log_std, ls_ref, atol=1e-6), "log_std mismatch"

    print("KERNEL_OK")
</pallas_src>

<mosaic_0001>
module attributes {stable_mosaic.version = 11 : i64} {
  func.func @_rnn_cell_kernel(%arg0: memref<8x21xf32, #tpu.memory_space<vmem>>, %arg1: memref<21x144xf32, #tpu.memory_space<vmem>>, %arg2: memref<16x128xf32, #tpu.memory_space<vmem>>, %arg3: memref<8x128xf32, #tpu.memory_space<vmem>>) attributes {dimension_semantics = [], scalar_prefetch = 0 : i64, scratch_operands = 0 : i64, tpu.core_type = #tpu.core_type<tc>} {
    %c0 = arith.constant 0 : index
    %c0_0 = arith.constant 0 : index
    %0 = vector.load %arg0[%c0, %c0_0] : memref<8x21xf32, #tpu.memory_space<vmem>>, vector<8x21xf32>
    %c0_1 = arith.constant 0 : index
    %c0_2 = arith.constant 0 : index
    %1 = vector.load %arg1[%c0_1, %c0_2] : memref<21x144xf32, #tpu.memory_space<vmem>>, vector<21x144xf32>
    %cst = arith.constant dense<0.000000e+00> : vector<8x144xf32>
    %2 = tpu.matmul %0, %1, %cst {dimension_numbers = #tpu.dot_dimension_numbers<[1], [0], [0], [1], [0, 0, 1, 1], [], []>} : vector<8x21xf32>, vector<21x144xf32>, vector<8x144xf32> -> vector<8x144xf32>
    %3 = vector.extract_strided_slice %2 {offsets = [0, 128], sizes = [8, 16], strides = [1, 1]} : vector<8x144xf32> to vector<8x16xf32>
    %4 = math.tanh %3 : vector<8x16xf32>
    %cst_3 = arith.constant 5.000000e-01 : f32
    %5 = vector.broadcast %cst_3 : f32 to vector<8x16xf32>
    %6 = arith.mulf %5, %3 : vector<8x16xf32>
    %7 = arith.subf %4, %6 : vector<8x16xf32>
    %8 = vector.extract_strided_slice %2 {offsets = [0, 0], sizes = [8, 128], strides = [1, 1]} : vector<8x144xf32> to vector<8x128xf32>
    %c0_4 = arith.constant 0 : index
    %c0_5 = arith.constant 0 : index
    %9 = vector.load %arg2[%c0_4, %c0_5] : memref<16x128xf32, #tpu.memory_space<vmem>>, vector<16x128xf32>
    %cst_6 = arith.constant dense<0.000000e+00> : vector<8x128xf32>
    %10 = tpu.matmul %7, %9, %cst_6 {dimension_numbers = #tpu.dot_dimension_numbers<[1], [0], [0], [1], [0, 0, 1, 1], [], []>} : vector<8x16xf32>, vector<16x128xf32>, vector<8x128xf32> -> vector<8x128xf32>
    %11 = arith.addf %8, %10 : vector<8x128xf32>
    %c0_7 = arith.constant 0 : index
    %c0_8 = arith.constant 0 : index
    %12 = vector.load %arg3[%c0_7, %c0_8] : memref<8x128xf32, #tpu.memory_space<vmem>>, vector<8x128xf32>
    tpu.vector_store %arg3[%c0_7, %c0_8], %11 {strides = array<i32>} : memref<8x128xf32, #tpu.memory_space<vmem>>, vector<8x128xf32>,
    return
  }
}

</mosaic_0001>

<bundles_post_ra>
// kernel: tpu_custom_call.1
= control target key start
LH: loop header
LB: loop body
LE: loop exit
PB: predicated region body
PF: predicated region fallthrough
CT: control target
= control target key end

     0   :  { %8 = vsyncpa [#allocation3], 0  ;;  %s394_s0 = inlined_call_operand.hbm [shape: f32[8,21], index: 0, kind: input, shape index: {}]   ;;  %s395_s1 = inlined_call_operand.hbm [shape: f32[21,144], index: 1, kind: input, shape index: {}]   ;;  %s396_s2 = inlined_call_operand.hbm [shape: f32[16,128], index: 2, kind: input, shape index: {}]   ;;  %s397_s3 = inlined_call_operand.hbm [shape: f32[8,128], index: 3, kind: output, shape index: {}]  }
   0x1   :  { %9 = vsyncpa [#allocation6], 0 }
   0x2   :  { %10 = vsyncpa [#allocation4], 0  ;;  %s352_s12 = smov [#allocation5]  }
   0x3   :  { %s26_s13 = sshll.u32 %s352_s12, 4  ;;  %s27_s13 = int_to_ptr.vmem [resolvable:$true] %s26_s13 }
   0x4   :  { %s274_s14 = scalar_lea.vmem %s27_s13, 768  ;;  %p279_p1 = scmp.lt.s32.totalorder %s27_s13, %s27_s13 }
   0x5   :  { %p275_p0 = scmp.ne.s32.totalorder %s27_s13, %s274_s14  ;;  %p280_p2 = scmp.lt.s32.totalorder %s274_s14, %s274_s14 }
   0x7   :  { %p281_p3 = por %p280_p2, %p279_p1 }
   0x9   :  { %p282_p4 = pnand %p281_p3, %p275_p0 }
   0xb   :  { %285 = shalt.err (!%p282_p4)
}
   0xc   :  { %s353_s15 = smov 256   ;;  %s354_s16 = smov 16  }
   0xd   :  { %32 = dma.hbm_to_vmem [thread:$0]  %s395_s1, 768, %s27_s13, [#allocation6], %s353_s15, %s353_s15, %s354_s16  }
   0xe   :  { %s355_s19 = smov [#allocation2]   ;;  %s356_s21 = smov [#allocation7]  }
   0xf   :  { %s17_s20 = sshll.u32 %s355_s19, 4  ;;  %s38_s22 = sshll.u32 %s356_s21, 4  ;;  %s18_s20 = int_to_ptr.vmem [resolvable:$true] %s17_s20  ;;  %s39_s22 = int_to_ptr.vmem [resolvable:$true] %s38_s22 }
  0x10   :  { %s294_s23 = scalar_lea.vmem %s18_s20, 128  ;;  %p299_p6 = scmp.lt.s32.totalorder %s18_s20, %s18_s20 }
  0x11   :  { %p295_p5 = scmp.ne.s32.totalorder %s18_s20, %s294_s23  ;;  %p300_p7 = scmp.lt.s32.totalorder %s294_s23, %s294_s23 }
  0x13   :  { %p301_p8 = por %p300_p7, %p299_p6 }
  0x15   :  { %p302_p9 = pnand %p301_p8, %p295_p5 }
  0x17   :  { %305 = shalt.err (!%p302_p9)
}
  0x18   :  { %20 = dma.hbm_to_vmem [thread:$0]  %s394_s0, 128, %s18_s20, [#allocation3]  }
  0x19   :  { %s314_s26 = scalar_lea.vmem %s39_s22, 256  ;;  %p319_p11 = scmp.lt.s32.totalorder %s39_s22, %s39_s22 }
  0x1a   :  { %p315_p10 = scmp.ne.s32.totalorder %s39_s22, %s314_s26  ;;  %p320_p12 = scmp.lt.s32.totalorder %s314_s26, %s314_s26 }
  0x1c   :  { %p321_p13 = por %p320_p12, %p319_p11 }
  0x1e   :  { %p322_p0 = pnand %p321_p13, %p315_p10 }
  0x20   :  { %325 = shalt.err (!%p322_p0)
}
  0x21   :  { %s357_s1 = smov 128   ;;  %s358_s27 = smov 8  }
  0x22   :  { %44 = dma.hbm_to_vmem [thread:$0]  %s396_s2, 256, %s39_s22, [#allocation6], %s357_s1, %s357_s1, %s358_s27  }
  0x23   :  { %346 = dma.done.wait [#allocation3], 128  }
  0x24   :  { %347 = vsyncadd [#allocation3], 4294967168 }
  0x25   :  { %348 = dma.done.wait [#allocation6], 1024  }
  0x26   :  { %349 = vsyncadd [#allocation6], 4294966272  ;;  %v359_v0 = vmov 0.0   ;;  %vm65_vm0 = vcmask 1044480   ;;  %v60_v1 = vld [vmem:[#allocation5 + $0x28] sm:$0x1f] }
  0x27   :  { %136 = vmatprep.mubr.f32.mxu0 %v359_v0  ;;  %247 = vmatprep.subr.mxu1 %v359_v0  ;;  %v59_v2 = vld [vmem:[#allocation5 + $0x20] sm:$0x1f]  ;;  %v58_v3 = vld [vmem:[#allocation5 + $0x18] sm:$0xff]  ;;  %v57_v4 = vld [vmem:[#allocation5 + $0x10] sm:$0xff]  ;;  %vm61_vm1 = vcmask 171008   ;;  %vm360_vm2 = vmmov 0  }
  0x28   :  { %240 = vmatprep.subr.msk.mxu0 %vm65_vm0, %v60_v1  ;;  %v56_v5 = vld [vmem:[#allocation5 + $0x8] sm:$0xff]  ;;  %v55_v6 = vld [vmem:[#allocation5] sm:$0xff]  ;;  %v54_v7 = vld [vmem:[#allocation2] sm:$0xff]  ;;  %251 = vmatprep.mubr.msk.f32.mxu1 %vm360_vm2, %v359_v0  ;;  %vm148_vm3 = vcmask 130048   ;;  %s361_s0 = smov [#allocation8]  }
  0x29   :  { %241 = vmatpush1.msk.msra.mxu0 %vm65_vm0, %v59_v2  ;;  %v147_v8 = vld [vmem:[#allocation7 + $0x8] sm:$0xff]  ;;  %v146_v9 = vld [vmem:[#allocation7] sm:$0xff]  ;;  %s230_s2 = sshll.u32 %s361_s0, 4  ;;  %s231_s2 = int_to_ptr.vmem [resolvable:$true] %s230_s2 }
  0x2a   :  { %100 = vmatprep.subr.mxu0 %v58_v3  ;;  %248 = vmatpush3.msra.mxu1 %v147_v8  ;;  %s326_s30 = scalar_lea.vmem %s231_s2, 128  ;;  %p331_p2 = scmp.lt.s32.totalorder %s231_s2, %s231_s2 }
  0x2b   :  { %101 = vmatpush1.msra.mxu0 %v57_v4  ;;  %249 = vmatprep.subr.mxu1 %v359_v0  ;;  %p327_p1 = scmp.ne.s32.totalorder %s231_s2, %s326_s30  ;;  %p332_p3 = scmp.lt.s32.totalorder %s326_s30, %s326_s30 }
  0x2c   :  { %102 = vmatprep.subr.mxu0 %v56_v5  ;;  %250 = vmatpush3.msra.mxu1 %v146_v9 }
  0x2d   :  { %103 = vmatpush1.msra.mxu0 %v55_v6  ;;  %p333_p4 = por %p332_p3, %p331_p2 }
  0x2e   :  { %242 = vmatmul.mubr.msk.f32.vlgmr.msra.gmra.mxu0 %vm61_vm1, %v54_v7 }
  0x2f   :  { %p334_p5 = pnand %p333_p4, %p327_p1 }
  0xee   :  { %v138_v10 = vpop.f32.mrf.mxu0 }
  0xf0   :  { %v140_v11 = vpop.f32.mrf.mxu0 }
  0xf1   :  { %264 = vtanh.f32 %v140_v11  ;;  %v144_v12 = vmul.f32 0.5, %v140_v11 }
  0xfe   :  { %v265_v13 = vpop.eup %264 }
  0xff   :  { %v145_v14 = vsub.f32 %v265_v13, %v144_v12 }
 0x101   :  { %252 = vmatmul.mubr.msk.f32.vlgmr.msra.gmra.mxu1 %vm148_vm3, %v145_v14 }
 0x1c1   :  { %v218_v15 = vpop.f32.mrf.mxu1 }
 0x1c2   :  { %v222_v16 = vadd.f32 %v218_v15, %v138_v10 }
 0x1c3   :  { %v253_v17 = vpop.f32.mrf.mxu1 }
 0x1c4   :  { %223 = vst [vmem:[#allocation8] sm:$0xff] %v222_v16 }
 0x1c5   :  { %337 = shalt.err (!%p334_p5)
}
 0x1c6   :  { %233 = dma.vmem_to_hbm [thread:$0]  %s231_s2, 128, %s397_s3, [#allocation4]  }
 0x1c7   :  { %350 = dma.done.wait [#allocation4], 128  }
 0x1c8   :  { %351 = vsyncadd [#allocation4], 4294967168 }
 0x1c9   :  { %237 = vsyncpa [#allocation3], 1 }
 0x1ca   :  { %238 = vsyncpa [#allocation6], 1 }
 0x1cb   :  { %239 = vsyncpa [#allocation4], 1 }

</bundles_post_ra>
